<compile_context>
chip_gen: v6e
topology: v6e:2x2x1
jax: 0.10.0
libtpu: 0.0.40
codegen_flags: <defaults>
</compile_context>

<pallas_src>
import functools

import jax
import jax.numpy as jnp
from jax.experimental import pallas as pl
from jax.experimental.pallas import tpu as pltpu

EPS = 0.0003  # self.eps in the PyTorch module

# Packed-input feature indices (leading axis of the [15, 8, C] slab).
_IN = dict(P=0, T=1, PET=2, SW0=3, SSL0=4, SSS0=5, TMIN=6, DDF=7, TMAX=8,
           QMAX=9, SMAX=10, F=11, ALPHA=12, BETA=13, MEANANTT=14)
NUM_IN_ROWS = 15
# Output features: Swt, Sst, Qb, Qs, E, Sslt, Ssst (alpha is a pure copy of
# dynParas[:, 1] and is returned directly from the wrapper).
NUM_OUT_ROWS = 7


def _exphydro_cell_kernel(in_ref, out_ref):
    # Each feature view is a fully dense (8, col_tile) tile.
    def r(name):
        return in_ref[_IN[name]]

    P, T, PET = r('P'), r('T'), r('PET')
    Sw0, Ssl0, Sss0 = r('SW0'), r('SSL0'), r('SSS0')
    parTMIN, parDDF, parTMAX = r('TMIN'), r('DDF'), r('TMAX')
    parQMAX, parSMAX = r('QMAX'), r('SMAX')
    parF, parALPHA, parBETA = r('F'), r('ALPHA'), r('BETA')
    meanAntT = r('MEANANTT')           # precomputed mean of antecedent temperature

    # ---------------- snowBucket ----------------
    pr = jnp.where(T >= parTMIN, P, 0.0)               # torch.mul(P, T >= parTMIN)
    ps = P - pr                                        # torch.mul(P, T <  parTMIN)
    melt = jnp.clip(parDDF * (T - parTMAX), 0.0, Sw0)  # clamp(min=0, max=Sw)
    Swt = Sw0 - melt + ps

    # ---------------- soilBucket ----------------
    Ss = jnp.minimum(Sss0 + Ssl0, parSMAX - EPS)       # clamp(max=..)
    freeze = meanAntT < 0.0
    minSss = jnp.where(freeze, Sss0, 0.0)
    maxSss = jnp.where(freeze, Ss, Sss0)
    Sss = minSss + (maxSss - minSss) * parALPHA
    Ssl = jnp.maximum(Ss - Sss, EPS)                   # clamp(min=eps)

    Qb = jnp.clip(parQMAX * jnp.exp(-parF * (parSMAX - Sss - Ssl)),
                  0.0, jnp.maximum(Ssl - EPS, parQMAX))

    # (Ssl / (parSMAX - Sss)) ** parBETA; base > 0 for valid lanes so
    # pow == exp(beta * log(base)); tiny floor is a defensive guard.
    ratio = jnp.maximum(Ssl / (parSMAX - Sss), 1e-30)
    cr = jnp.clip(jnp.exp(parBETA * jnp.log(ratio)), 0.0, 1.0)

    et = jnp.minimum(PET * cr, Ssl - Qb)               # clamp(max=..)
    Ssl = Ssl + pr + melt - et - Qb
    Qs = jnp.maximum(Ssl - (parSMAX - Sss), 0.0)       # clamp(min=0)
    Ssl = Ssl - Qs
    Sst = Ssl + Sss

    # Full-density (8, col_tile) stores, one per output feature.
    out_ref[0] = Swt
    out_ref[1] = Sst
    out_ref[2] = Qb
    out_ref[3] = Qs
    out_ref[4] = et
    out_ref[5] = Ssl
    out_ref[6] = Sss


@functools.partial(jax.jit, static_argnames=('col_tile',))
def exphydro_cell_forward(forcing, S0, staParas, dynParas, antT, *, col_tile=8192):
    """One ExpHYDROCell.forward step.

    forcing   [N, 3]   (P, T, PET)
    S0        [N, 3]   (Sw, Ssl, Sss)
    staParas  [N, 7]   (TMIN, DDF, TMAX, QMAX, A, B, SMAX)
    dynParas  [N, 3]   (F, ALPHA, BETA)
    antT      [N, tLen] antecedent-temperature buffer (module state)
    """
    N = forcing.shape[0]
    f32 = jnp.float32

    # Antecedent-temperature buffer update (module state, wrapper glue).
    # Faithful port of torch: cat(antT[:, -(len(antT)-1):], T.unsqueeze(-1)),
    # where len(self.antT) is the ROW count (= number of basins N).
    # TODO(synk): the intended slice is almost certainly antT[:, -(tLen-1):];
    # kept len(antT)=N to match the PyTorch module exactly.
    T_col = forcing[:, 1:2]
    antT_new = jnp.concatenate([antT[:, -(N - 1):], T_col], axis=-1).astype(f32)
    meanAntT = jnp.mean(antT_new, axis=-1)   # [N] — the only thing the kernel needs

    # ---- lane-dense 3-D packing: [feature, 8 sublanes, C columns] ----
    C = pl.cdiv(N, 8 * 128) * 128            # cols per sublane row, multiple of 128
    ct = min(col_tile, C)
    if (C // ct) < 2 and C % 256 == 0:
        ct = C // 2                           # keep grid >= 2 (v7x megacore) for free
    C_pad = pl.cdiv(C, ct) * ct
    Npad = 8 * C_pad
    grid = (C_pad // ct,)

    def row(x, fill=0.0):
        return jnp.pad(x.astype(f32), (0, Npad - N),
                       constant_values=fill).reshape(8, C_pad)

    # TODO(synk): when stepping this cell over many timesteps, keep params /
    # state resident in this packed layout across calls (pack once, not per
    # forward) and fuse the time loop into the kernel (grid axis over t with
    # state in VMEM scratch) — the largest remaining end-to-end win.
    packed = jnp.stack([
        row(forcing[:, 0]),             # P
        row(forcing[:, 1]),             # T
        row(forcing[:, 2]),             # PET
        row(S0[:, 0]),                  # Sw0
        row(S0[:, 1]),                  # Ssl0
        row(S0[:, 2]),                  # Sss0
        row(staParas[:, 0]),            # parTMIN
        row(staParas[:, 1]),            # parDDF
        row(staParas[:, 2]),            # parTMAX
        row(staParas[:, 3]),            # parQMAX
        row(staParas[:, 6], fill=1.0),  # parSMAX (fill>0 keeps padded lanes finite)
        row(dynParas[:, 0]),            # parF
        row(dynParas[:, 1]),            # parALPHA
        row(dynParas[:, 2]),            # parBETA
        row(meanAntT),                  # mean antecedent temperature
    ], axis=0)

    # Double-buffered working set; cap at 48 MiB (v7x has only 64 MiB VMEM/TC).
    vmem_needed = 2 * (NUM_IN_ROWS + NUM_OUT_ROWS) * 8 * ct * 4
    vmem_limit = int(min(48 * 1024 * 1024, max(2 * vmem_needed, 16 * 1024 * 1024)))

    out = pl.pallas_call(
        _exphydro_cell_kernel,
        out_shape=jax.ShapeDtypeStruct((NUM_OUT_ROWS, 8, C_pad), f32),
        grid_spec=pltpu.PrefetchScalarGridSpec(
            num_scalar_prefetch=0,
            grid=grid,
            in_specs=[pl.BlockSpec((NUM_IN_ROWS, 8, ct), lambda i: (0, 0, i))],
            out_specs=pl.BlockSpec((NUM_OUT_ROWS, 8, ct), lambda i: (0, 0, i)),
        ),
        compiler_params=pltpu.CompilerParams(
            dimension_semantics=("parallel",),
            vmem_limit_bytes=vmem_limit),
    )(packed)

    out = out.reshape(NUM_OUT_ROWS, Npad)[:, :N]
    output = {
        'Swt':   out[0],
        'Sst':   out[1],
        'Qb':    out[2],
        'Qs':    out[3],
        'E':     out[4],
        'Sslt':  out[5],
        'Ssst':  out[6],
        'alpha': dynParas[:, 1].astype(f32),   # pure copy; no kernel round-trip
    }
    return output, antT_new


def _reference(forcing, S0, staParas, dynParas, antT):
    """Pure-JAX mirror of the PyTorch forward, for correctness checking."""
    N = forcing.shape[0]
    P, T, PET = forcing[:, 0], forcing[:, 1], forcing[:, 2]
    antT_new = jnp.concatenate([antT[:, -(N - 1):], T[:, None]], axis=-1)
    Sw0, Ssl0, Sss0 = S0[:, 0], S0[:, 1], S0[:, 2]
    parTMIN, parDDF, parTMAX, parQMAX = (staParas[:, 0], staParas[:, 1],
                                         staParas[:, 2], staParas[:, 3])
    parSMAX = staParas[:, 6]
    parF, parALPHA, parBETA = dynParas[:, 0], dynParas[:, 1], dynParas[:, 2]

    pr = P * (T >= parTMIN)
    ps = P * (T < parTMIN)
    melt = jnp.clip(parDDF * (T - parTMAX), 0.0, Sw0)
    Swt = Sw0 - melt + ps

    Ss = jnp.minimum(Sss0 + Ssl0, parSMAX - EPS)
    freezeFlag = jnp.mean(antT_new, axis=-1) < 0
    minSss = jnp.where(freezeFlag, Sss0, jnp.zeros_like(Sss0))
    maxSss = jnp.where(freezeFlag, Ss, Sss0)
    Sss = minSss + (maxSss - minSss) * parALPHA
    Ssl = jnp.maximum(Ss - Sss, EPS)
    Qb = jnp.clip(parQMAX * jnp.exp(-parF * (parSMAX - Sss - Ssl)),
                  jnp.zeros_like(parQMAX), jnp.maximum(Ssl - EPS, parQMAX))
    cr = jnp.clip((Ssl / (parSMAX - Sss)) ** parBETA, 0.0, 1.0)
    et = jnp.minimum(PET * cr, Ssl - Qb)
    Ssl = Ssl + pr + melt - et - Qb
    Qs = jnp.maximum(Ssl - (parSMAX - Sss), 0.0)
    Ssl = Ssl - Qs
    return {'Swt': Swt, 'Sst': Ssl + Sss, 'Qb': Qb, 'Qs': Qs, 'E': et,
            'Sslt': Ssl, 'Ssst': Sss, 'alpha': parALPHA}


def _make_inputs(key, N, tLen):
    ks = jax.random.split(key, 16)
    P  = jax.random.uniform(ks[0], (N,), minval=0.0, maxval=10.0)
    T  = jax.random.uniform(ks[1], (N,), minval=-5.0, maxval=5.0)
    Ep = jax.random.uniform(ks[2], (N,), minval=0.0, maxval=5.0)
    forcing = jnp.stack([P, T, Ep], axis=1).astype(jnp.float32)

    S0 = jax.random.uniform(ks[3], (N, 3), minval=0.5, maxval=50.0).astype(jnp.float32)

    staParas = jnp.stack([
        jax.random.uniform(ks[4],  (N,), minval=-3.0,  maxval=0.0),    # parTMIN
        jax.random.uniform(ks[5],  (N,), minval=0.0,   maxval=5.0),    # parDDF
        jax.random.uniform(ks[6],  (N,), minval=0.0,   maxval=3.0),    # parTMAX
        jax.random.uniform(ks[7],  (N,), minval=10.0,  maxval=50.0),   # parQMAX
        jax.random.uniform(ks[8],  (N,), minval=0.0,   maxval=2.9),    # parA (unused in fwd)
        jax.random.uniform(ks[9],  (N,), minval=0.0,   maxval=6.5),    # parB (unused in fwd)
        jax.random.uniform(ks[10], (N,), minval=100.0, maxval=1500.0), # parSMAX
    ], axis=1).astype(jnp.float32)

    dynParas = jnp.stack([
        jax.random.uniform(ks[11], (N,), minval=0.0, maxval=0.1),      # parF
        jax.random.uniform(ks[12], (N,), minval=0.0, maxval=1.0),      # parALPHA
        jax.random.uniform(ks[13], (N,), minval=0.5, maxval=2.0),      # parBETA
    ], axis=1).astype(jnp.float32)

    antT = jax.random.uniform(ks[14], (N, tLen), minval=-5.0, maxval=5.0).astype(jnp.float32)
    return forcing, S0, staParas, dynParas, antT


if __name__ == "__main__":
    key = jax.random.PRNGKey(0)
    k1, k2 = jax.random.split(key)

    # Small primary case (N=4 basins, tLen=5) + a case that exercises
    # multi-sublane packing and a 2-tile grid (N=2048).
    for N, k in ((4, k1), (2048, k2)):
        forcing, S0, staParas, dynParas, antT = _make_inputs(k, N, tLen=5)
        out, antT_new = exphydro_cell_forward(forcing, S0, staParas, dynParas, antT)
        jax.block_until_ready(out)

        ref = _reference(forcing, S0, staParas, dynParas, antT)
        for name in ref:
            assert jnp.allclose(out[name], ref[name], rtol=1e-4, atol=1e-4), (N, name)

    print("KERNEL_OK")
</pallas_src>

<mosaic_0001>
module attributes {stable_mosaic.version = 11 : i64} {
  func.func @_exphydro_cell_kernel(%arg0: i32, %arg1: memref<15x8x128xf32, #tpu.memory_space<vmem>>, %arg2: memref<7x8x128xf32, #tpu.memory_space<vmem>>) attributes {dimension_semantics = [#tpu.dimension_semantics<parallel>], iteration_bounds = array<i64: 1>, scalar_prefetch = 0 : i64, scratch_operands = 0 : i64, tpu.core_type = #tpu.core_type<tc>, window_params = [{transform_indices = @transform_0, window_bounds = array<i64: 15, 8, 128>}, {transform_indices = @transform_1, window_bounds = array<i64: 7, 8, 128>}]} {
    %c0 = arith.constant 0 : index
    %c0_0 = arith.constant 0 : index
    %c0_1 = arith.constant 0 : index
    %0 = vector.load %arg1[%c0, %c0_0, %c0_1] : memref<15x8x128xf32, #tpu.memory_space<vmem>>, vector<1x8x128xf32>
    %1 = vector.shape_cast %0 : vector<1x8x128xf32> to vector<8x128xf32>
    %c1 = arith.constant 1 : index
    %c0_2 = arith.constant 0 : index
    %c0_3 = arith.constant 0 : index
    %2 = vector.load %arg1[%c1, %c0_2, %c0_3] : memref<15x8x128xf32, #tpu.memory_space<vmem>>, vector<1x8x128xf32>
    %3 = vector.shape_cast %2 : vector<1x8x128xf32> to vector<8x128xf32>
    %c2 = arith.constant 2 : index
    %c0_4 = arith.constant 0 : index
    %c0_5 = arith.constant 0 : index
    %4 = vector.load %arg1[%c2, %c0_4, %c0_5] : memref<15x8x128xf32, #tpu.memory_space<vmem>>, vector<1x8x128xf32>
    %5 = vector.shape_cast %4 : vector<1x8x128xf32> to vector<8x128xf32>
    %c3 = arith.constant 3 : index
    %c0_6 = arith.constant 0 : index
    %c0_7 = arith.constant 0 : index
    %6 = vector.load %arg1[%c3, %c0_6, %c0_7] : memref<15x8x128xf32, #tpu.memory_space<vmem>>, vector<1x8x128xf32>
    %7 = vector.shape_cast %6 : vector<1x8x128xf32> to vector<8x128xf32>
    %c4 = arith.constant 4 : index
    %c0_8 = arith.constant 0 : index
    %c0_9 = arith.constant 0 : index
    %8 = vector.load %arg1[%c4, %c0_8, %c0_9] : memref<15x8x128xf32, #tpu.memory_space<vmem>>, vector<1x8x128xf32>
    %9 = vector.shape_cast %8 : vector<1x8x128xf32> to vector<8x128xf32>
    %c5 = arith.constant 5 : index
    %c0_10 = arith.constant 0 : index
    %c0_11 = arith.constant 0 : index
    %10 = vector.load %arg1[%c5, %c0_10, %c0_11] : memref<15x8x128xf32, #tpu.memory_space<vmem>>, vector<1x8x128xf32>
    %11 = vector.shape_cast %10 : vector<1x8x128xf32> to vector<8x128xf32>
    %c6 = arith.constant 6 : index
    %c0_12 = arith.constant 0 : index
    %c0_13 = arith.constant 0 : index
    %12 = vector.load %arg1[%c6, %c0_12, %c0_13] : memref<15x8x128xf32, #tpu.memory_space<vmem>>, vector<1x8x128xf32>
    %13 = vector.shape_cast %12 : vector<1x8x128xf32> to vector<8x128xf32>
    %c7 = arith.constant 7 : index
    %c0_14 = arith.constant 0 : index
    %c0_15 = arith.constant 0 : index
    %14 = vector.load %arg1[%c7, %c0_14, %c0_15] : memref<15x8x128xf32, #tpu.memory_space<vmem>>, vector<1x8x128xf32>
    %15 = vector.shape_cast %14 : vector<1x8x128xf32> to vector<8x128xf32>
    %c8 = arith.constant 8 : index
    %c0_16 = arith.constant 0 : index
    %c0_17 = arith.constant 0 : index
    %16 = vector.load %arg1[%c8, %c0_16, %c0_17] : memref<15x8x128xf32, #tpu.memory_space<vmem>>, vector<1x8x128xf32>
    %17 = vector.shape_cast %16 : vector<1x8x128xf32> to vector<8x128xf32>
    %c9 = arith.constant 9 : index
    %c0_18 = arith.constant 0 : index
    %c0_19 = arith.constant 0 : index
    %18 = vector.load %arg1[%c9, %c0_18, %c0_19] : memref<15x8x128xf32, #tpu.memory_space<vmem>>, vector<1x8x128xf32>
    %19 = vector.shape_cast %18 : vector<1x8x128xf32> to vector<8x128xf32>
    %c10 = arith.constant 10 : index
    %c0_20 = arith.constant 0 : index
    %c0_21 = arith.constant 0 : index
    %20 = vector.load %arg1[%c10, %c0_20, %c0_21] : memref<15x8x128xf32, #tpu.memory_space<vmem>>, vector<1x8x128xf32>
    %21 = vector.shape_cast %20 : vector<1x8x128xf32> to vector<8x128xf32>
    %c11 = arith.constant 11 : index
    %c0_22 = arith.constant 0 : index
    %c0_23 = arith.constant 0 : index
    %22 = vector.load %arg1[%c11, %c0_22, %c0_23] : memref<15x8x128xf32, #tpu.memory_space<vmem>>, vector<1x8x128xf32>
    %23 = vector.shape_cast %22 : vector<1x8x128xf32> to vector<8x128xf32>
    %c12 = arith.constant 12 : index
    %c0_24 = arith.constant 0 : index
    %c0_25 = arith.constant 0 : index
    %24 = vector.load %arg1[%c12, %c0_24, %c0_25] : memref<15x8x128xf32, #tpu.memory_space<vmem>>, vector<1x8x128xf32>
    %25 = vector.shape_cast %24 : vector<1x8x128xf32> to vector<8x128xf32>
    %c13 = arith.constant 13 : index
    %c0_26 = arith.constant 0 : index
    %c0_27 = arith.constant 0 : index
    %26 = vector.load %arg1[%c13, %c0_26, %c0_27] : memref<15x8x128xf32, #tpu.memory_space<vmem>>, vector<1x8x128xf32>
    %27 = vector.shape_cast %26 : vector<1x8x128xf32> to vector<8x128xf32>
    %c14 = arith.constant 14 : index
    %c0_28 = arith.constant 0 : index
    %c0_29 = arith.constant 0 : index
    %28 = vector.load %arg1[%c14, %c0_28, %c0_29] : memref<15x8x128xf32, #tpu.memory_space<vmem>>, vector<1x8x128xf32>
    %29 = vector.shape_cast %28 : vector<1x8x128xf32> to vector<8x128xf32>
    %30 = arith.cmpf oge, %3, %13 : vector<8x128xf32>
    %cst = arith.constant 0.000000e+00 : f32
    %31 = vector.broadcast %cst : f32 to vector<8x128xf32>
    %32 = arith.select %30, %1, %31 : vector<8x128xi1>, vector<8x128xf32>
    %33 = arith.subf %1, %32 : vector<8x128xf32>
    %34 = arith.subf %3, %17 : vector<8x128xf32>
    %35 = arith.mulf %15, %34 : vector<8x128xf32>
    %cst_30 = arith.constant 0.000000e+00 : f32
    %36 = vector.broadcast %cst_30 : f32 to vector<8x128xf32>
    %37 = arith.maximumf %36, %35 : vector<8x128xf32>
    %38 = arith.minimumf %7, %37 : vector<8x128xf32>
    %39 = arith.subf %7, %38 : vector<8x128xf32>
    %40 = arith.addf %39, %33 : vector<8x128xf32>
    %41 = arith.addf %11, %9 : vector<8x128xf32>
    %cst_31 = arith.constant 3.000000e-04 : f32
    %42 = vector.broadcast %cst_31 : f32 to vector<8x128xf32>
    %43 = arith.subf %21, %42 : vector<8x128xf32>
    %44 = arith.minimumf %41, %43 : vector<8x128xf32>
    %cst_32 = arith.constant 0.000000e+00 : f32
    %45 = vector.broadcast %cst_32 : f32 to vector<8x128xf32>
    %46 = arith.cmpf olt, %29, %45 : vector<8x128xf32>
    %cst_33 = arith.constant 0.000000e+00 : f32
    %47 = vector.broadcast %cst_33 : f32 to vector<8x128xf32>
    %48 = arith.select %46, %11, %47 : vector<8x128xi1>, vector<8x128xf32>
    %49 = arith.select %46, %44, %11 : vector<8x128xi1>, vector<8x128xf32>
    %50 = arith.subf %49, %48 : vector<8x128xf32>
    %51 = arith.mulf %50, %25 : vector<8x128xf32>
    %52 = arith.addf %48, %51 : vector<8x128xf32>
    %53 = arith.subf %44, %52 : vector<8x128xf32>
    %cst_34 = arith.constant 3.000000e-04 : f32
    %54 = vector.broadcast %cst_34 : f32 to vector<8x128xf32>
    %55 = arith.maximumf %53, %54 : vector<8x128xf32>
    %cst_35 = arith.constant 0.000000e+00 : f32
    %56 = vector.broadcast %cst_35 : f32 to vector<8x128xf32>
    %57 = arith.subf %56, %23 : vector<8x128xf32>
    %58 = arith.subf %21, %52 : vector<8x128xf32>
    %59 = arith.subf %58, %55 : vector<8x128xf32>
    %60 = arith.mulf %57, %59 : vector<8x128xf32>
    %61 = math.exp %60 : vector<8x128xf32>
    %62 = arith.mulf %19, %61 : vector<8x128xf32>
    %cst_36 = arith.constant 3.000000e-04 : f32
    %63 = vector.broadcast %cst_36 : f32 to vector<8x128xf32>
    %64 = arith.subf %55, %63 : vector<8x128xf32>
    %65 = arith.maximumf %64, %19 : vector<8x128xf32>
    %cst_37 = arith.constant 0.000000e+00 : f32
    %66 = vector.broadcast %cst_37 : f32 to vector<8x128xf32>
    %67 = arith.maximumf %66, %62 : vector<8x128xf32>
    %68 = arith.minimumf %65, %67 : vector<8x128xf32>
    %69 = arith.subf %21, %52 : vector<8x128xf32>
    %70 = arith.divf %55, %69 : vector<8x128xf32>
    %cst_38 = arith.constant 1.000000e-30 : f32
    %71 = vector.broadcast %cst_38 : f32 to vector<8x128xf32>
    %72 = arith.maximumf %70, %71 : vector<8x128xf32>
    %73 = math.log %72 : vector<8x128xf32>
    %74 = arith.mulf %27, %73 : vector<8x128xf32>
    %75 = math.exp %74 : vector<8x128xf32>
    %cst_39 = arith.constant 0.000000e+00 : f32
    %cst_40 = arith.constant 1.000000e+00 : f32
    %76 = vector.broadcast %cst_39 : f32 to vector<8x128xf32>
    %77 = arith.maximumf %76, %75 : vector<8x128xf32>
    %78 = vector.broadcast %cst_40 : f32 to vector<8x128xf32>
    %79 = arith.minimumf %78, %77 : vector<8x128xf32>
    %80 = arith.mulf %5, %79 : vector<8x128xf32>
    %81 = arith.subf %55, %68 : vector<8x128xf32>
    %82 = arith.minimumf %80, %81 : vector<8x128xf32>
    %83 = arith.addf %55, %32 : vector<8x128xf32>
    %84 = arith.addf %83, %38 : vector<8x128xf32>
    %85 = arith.subf %84, %82 : vector<8x128xf32>
    %86 = arith.subf %85, %68 : vector<8x128xf32>
    %87 = arith.subf %21, %52 : vector<8x128xf32>
    %88 = arith.subf %86, %87 : vector<8x128xf32>
    %cst_41 = arith.constant 0.000000e+00 : f32
    %89 = vector.broadcast %cst_41 : f32 to vector<8x128xf32>
    %90 = arith.maximumf %88, %89 : vector<8x128xf32>
    %91 = arith.subf %86, %90 : vector<8x128xf32>
    %92 = arith.addf %91, %52 : vector<8x128xf32>
    %c0_42 = arith.constant 0 : index
    %c0_43 = arith.constant 0 : index
    %c0_44 = arith.constant 0 : index
    %93 = vector.load %arg2[%c0_42, %c0_43, %c0_44] : memref<7x8x128xf32, #tpu.memory_space<vmem>>, vector<1x8x128xf32>
    %94 = vector.shape_cast %93 : vector<1x8x128xf32> to vector<8x128xf32>
    %95 = vector.shape_cast %40 : vector<8x128xf32> to vector<1x8x128xf32>
    tpu.vector_store %arg2[%c0_42, %c0_43, %c0_44], %95 {strides = array<i32>} : memref<7x8x128xf32, #tpu.memory_space<vmem>>, vector<1x8x128xf32>,
    %c1_45 = arith.constant 1 : index
    %c0_46 = arith.constant 0 : index
    %c0_47 = arith.constant 0 : index
    %96 = vector.load %arg2[%c1_45, %c0_46, %c0_47] : memref<7x8x128xf32, #tpu.memory_space<vmem>>, vector<1x8x128xf32>
    %97 = vector.shape_cast %96 : vector<1x8x128xf32> to vector<8x128xf32>
    %98 = vector.shape_cast %92 : vector<8x128xf32> to vector<1x8x128xf32>
    tpu.vector_store %arg2[%c1_45, %c0_46, %c0_47], %98 {strides = array<i32>} : memref<7x8x128xf32, #tpu.memory_space<vmem>>, vector<1x8x128xf32>,
    %c2_48 = arith.constant 2 : index
    %c0_49 = arith.constant 0 : index
    %c0_50 = arith.constant 0 : index
    %99 = vector.load %arg2[%c2_48, %c0_49, %c0_50] : memref<7x8x128xf32, #tpu.memory_space<vmem>>, vector<1x8x128xf32>
    %100 = vector.shape_cast %99 : vector<1x8x128xf32> to vector<8x128xf32>
    %101 = vector.shape_cast %68 : vector<8x128xf32> to vector<1x8x128xf32>
    tpu.vector_store %arg2[%c2_48, %c0_49, %c0_50], %101 {strides = array<i32>} : memref<7x8x128xf32, #tpu.memory_space<vmem>>, vector<1x8x128xf32>,
    %c3_51 = arith.constant 3 : index
    %c0_52 = arith.constant 0 : index
    %c0_53 = arith.constant 0 : index
    %102 = vector.load %arg2[%c3_51, %c0_52, %c0_53] : memref<7x8x128xf32, #tpu.memory_space<vmem>>, vector<1x8x128xf32>
    %103 = vector.shape_cast %102 : vector<1x8x128xf32> to vector<8x128xf32>
    %104 = vector.shape_cast %90 : vector<8x128xf32> to vector<1x8x128xf32>
    tpu.vector_store %arg2[%c3_51, %c0_52, %c0_53], %104 {strides = array<i32>} : memref<7x8x128xf32, #tpu.memory_space<vmem>>, vector<1x8x128xf32>,
    %c4_54 = arith.constant 4 : index
    %c0_55 = arith.constant 0 : index
    %c0_56 = arith.constant 0 : index
    %105 = vector.load %arg2[%c4_54, %c0_55, %c0_56] : memref<7x8x128xf32, #tpu.memory_space<vmem>>, vector<1x8x128xf32>
    %106 = vector.shape_cast %105 : vector<1x8x128xf32> to vector<8x128xf32>
    %107 = vector.shape_cast %82 : vector<8x128xf32> to vector<1x8x128xf32>
    tpu.vector_store %arg2[%c4_54, %c0_55, %c0_56], %107 {strides = array<i32>} : memref<7x8x128xf32, #tpu.memory_space<vmem>>, vector<1x8x128xf32>,
    %c5_57 = arith.constant 5 : index
    %c0_58 = arith.constant 0 : index
    %c0_59 = arith.constant 0 : index
    %108 = vector.load %arg2[%c5_57, %c0_58, %c0_59] : memref<7x8x128xf32, #tpu.memory_space<vmem>>, vector<1x8x128xf32>
    %109 = vector.shape_cast %108 : vector<1x8x128xf32> to vector<8x128xf32>
    %110 = vector.shape_cast %91 : vector<8x128xf32> to vector<1x8x128xf32>
    tpu.vector_store %arg2[%c5_57, %c0_58, %c0_59], %110 {strides = array<i32>} : memref<7x8x128xf32, #tpu.memory_space<vmem>>, vector<1x8x128xf32>,
    %c6_60 = arith.constant 6 : index
    %c0_61 = arith.constant 0 : index
    %c0_62 = arith.constant 0 : index
    %111 = vector.load %arg2[%c6_60, %c0_61, %c0_62] : memref<7x8x128xf32, #tpu.memory_space<vmem>>, vector<1x8x128xf32>
    %112 = vector.shape_cast %111 : vector<1x8x128xf32> to vector<8x128xf32>
    %113 = vector.shape_cast %52 : vector<8x128xf32> to vector<1x8x128xf32>
    tpu.vector_store %arg2[%c6_60, %c0_61, %c0_62], %113 {strides = array<i32>} : memref<7x8x128xf32, #tpu.memory_space<vmem>>, vector<1x8x128xf32>,
    return
  }
  func.func @transform_0(%arg0: i32) -> (i32, i32, i32) {
    %c0_i32 = arith.constant 0 : i32
    %c0_i32_0 = arith.constant 0 : i32
    %c0_i32_1 = arith.constant 0 : i32
    return %c0_i32, %c0_i32_0, %arg0 : i32, i32, i32
  }
  func.func @transform_1(%arg0: i32) -> (i32, i32, i32) {
    %c0_i32 = arith.constant 0 : i32
    %c0_i32_0 = arith.constant 0 : i32
    %c0_i32_1 = arith.constant 0 : i32
    return %c0_i32, %c0_i32_0, %arg0 : i32, i32, i32
  }
}

</mosaic_0001>

<bundles_post_ra>
// kernel: exphydro_cell_forward.1
= control target key start
LH: loop header
LB: loop body
LE: loop exit
PB: predicated region body
PF: predicated region fallthrough
CT: control target
= control target key end

     0   :  { %s212_s0 = inlined_call_operand.vmem [shape: f32[15,8,128], index: 0, kind: input, shape index: {}]   ;;  %s213_s1 = inlined_call_operand.vmem [shape: f32[7,8,128], index: 1, kind: output, shape index: {}]  }
   0x1   :  { %v106_v0 = vld [vmem:[%s212_s0 + $0x8] sm:$0xff]  ;;  %v109_v1 = vld [vmem:[%s212_s0 + $0x20] sm:$0xff]  ;;  %v111_v3 = vld [vmem:[%s212_s0 + $0x30] sm:$0xff] }
   0x2   :  { %v110_v2 = vld [vmem:[%s212_s0 + $0x28] sm:$0xff]  ;;  %v112_v4 = vld [vmem:[%s212_s0 + $0x38] sm:$0xff]  ;;  %v113_v5 = vld [vmem:[%s212_s0 + $0x40] sm:$0xff]  ;;  %vm37_vm1 = vcmp.ge.f32.partialorder %v106_v0, %v111_v3 }
   0x3   :  { %v115_v6 = vld [vmem:[%s212_s0 + $0x50] sm:$0xff]  ;;  %v46_v7 = vadd.f32 %v110_v2, %v109_v1  ;;  %v40_v9 = vsub.f32 %v106_v0, %v113_v5  ;;  %v8_v11 = vld [vmem:[%s212_s0] sm:$0xff]  ;;  %v108_v15 = vld [vmem:[%s212_s0 + $0x18] sm:$0xff] }
   0x4   :  { %v119_v8 = vld [vmem:[%s212_s0 + $0x70] sm:$0xff]  ;;  %v120_v10 = vadd.f32 -0.0003, %v115_v6  ;;  %v117_v16 = vld [vmem:[%s212_s0 + $0x60] sm:$0xff]  ;;  %v38_v19 = vsel %vm37_vm1, %v8_v11, 0.0  ;;  %v116_v27 = vld [vmem:[%s212_s0 + $0x58] sm:$0xff] }
   0x5   :  { %vm49_vm0 = vcmp.lt.f32.partialorder %v119_v8, 0.0  ;;  %v41_v12 = vmul.f32 %v112_v4, %v40_v9  ;;  %v39_v21 = vsub.f32 %v8_v11, %v38_v19  ;;  %v57_v31 = vsub.f32 0.0, %v116_v27  ;;  %v114_v39 = vld [vmem:[%s212_s0 + $0x48] sm:$0xff]  ;;  %v107_v53 = vld [vmem:[%s212_s0 + $0x10] sm:$0xff] }
   0x6   :  { %v48_v13 = vmin.f32 %v46_v7, %v120_v10  ;;  %v50_v14 = vsel %vm49_vm0, %v110_v2, 0.0  ;;  %v118_v46 = vld [vmem:[%s212_s0 + $0x68] sm:$0xff] }
   0x7   :  { %v42_v17 = vmax.f32 %v41_v12, 0.0 }
   0x8   :  { %v51_v18 = vsel %vm49_vm0, %v48_v13, %v110_v2 }
   0x9   :  { %v52_v20 = vsub.f32 %v51_v18, %v50_v14  ;;  %v43_v22 = vmin.f32 %v108_v15, %v42_v17 }
   0xb   :  { %v53_v23 = vmul.f32 %v117_v16, %v52_v20  ;;  %v44_v24 = vsub.f32 %v108_v15, %v43_v22 }
   0xd   :  { %v54_v25 = vadd.f32 %v53_v23, %v50_v14  ;;  %v45_v26 = vadd.f32 %v44_v24, %v39_v21 }
   0xf   :  { %v55_v28 = vsub.f32 %v48_v13, %v54_v25  ;;  %127 = vst [vmem:[%s213_s1 + $0x30] sm:$0xff] %v54_v25  ;;  %v58_v29 = vsub.f32 %v115_v6, %v54_v25  ;;  %89 = vst [vmem:[%s213_s1] sm:$0xff] %v45_v26 }
  0x11   :  { %v56_v30 = vmax.f32 %v55_v28, 0.0003  ;;  %128 = vrcp.f32 %v58_v29 }
  0x13   :  { %v59_v32 = vsub.f32 %v58_v29, %v56_v30  ;;  %v121_v38 = vadd.f32 -0.0003, %v56_v30  ;;  %v81_v51 = vadd.f32 %v56_v30, %v38_v19 }
  0x15   :  { %v60_v33 = vmul.f32 %v59_v32, %v57_v31  ;;  %v65_v42 = vmax.f32 %v121_v38, %v114_v39  ;;  %v82_v56 = vadd.f32 %v81_v51, %v43_v22 }
  0x17   :  { %v61_v34 = vmul.f32 1.442695, %v60_v33 }
  0x19   :  { %130 = vpow2.f32 %v61_v34 }
  0x1e   :  { %v129_v35 = vpop.eup %128 }
  0x1f   :  { %v69_v36 = vmul.f32 %v129_v35, %v56_v30 }
  0x21   :  { %v70_v37 = vmax.f32 %v69_v36, 1e-30 }
  0x23   :  { %132 = vlog2.f32 %v70_v37 }
  0x26   :  { %v131_v40 = vpop.eup %130 }
  0x27   :  { %v63_v41 = vmul.f32 %v131_v40, %v114_v39 }
  0x29   :  { %v66_v43 = vmax.f32 %v63_v41, 0.0 }
  0x2b   :  { %v67_v44 = vmin.f32 %v65_v42, %v66_v43 }
  0x2d   :  { %123 = vst [vmem:[%s213_s1 + $0x10] sm:$0xff] %v67_v44  ;;  %v79_v55 = vsub.f32 %v56_v30, %v67_v44 }
  0x30   :  { %v133_v45 = vpop.eup %132 }
  0x31   :  { %v72_v47 = vmul.f32 0.6931472, %v133_v45 }
  0x33   :  { %v73_v48 = vmul.f32 %v118_v46, %v72_v47 }
  0x35   :  { %v74_v49 = vmul.f32 1.442695, %v73_v48 }
  0x37   :  { %134 = vpow2.f32 %v74_v49 }
  0x44   :  { %v135_v50 = vpop.eup %134 }
  0x45   :  { %v76_v52 = vmax.f32 %v135_v50, 0.0 }
  0x47   :  { %v77_v54 = vmin.f32 %v76_v52, 1.0 }
  0x49   :  { %v78_v57 = vmul.f32 %v107_v53, %v77_v54 }
  0x4b   :  { %v80_v58 = vmin.f32 %v78_v57, %v79_v55 }
  0x4d   :  { %v83_v59 = vsub.f32 %v82_v56, %v80_v58  ;;  %125 = vst [vmem:[%s213_s1 + $0x20] sm:$0xff] %v80_v58 }
  0x4f   :  { %v84_v60 = vsub.f32 %v83_v59, %v67_v44 }
  0x51   :  { %v85_v61 = vsub.f32 %v84_v60, %v58_v29 }
  0x53   :  { %v86_v62 = vmax.f32 %v85_v61, 0.0 }
  0x55   :  { %v87_v63 = vsub.f32 %v84_v60, %v86_v62  ;;  %124 = vst [vmem:[%s213_s1 + $0x18] sm:$0xff] %v86_v62 }
  0x57   :  { %v88_v0 = vadd.f32 %v87_v63, %v54_v25  ;;  %126 = vst [vmem:[%s213_s1 + $0x28] sm:$0xff] %v87_v63 }
  0x59   :  { %122 = vst [vmem:[%s213_s1 + $0x8] sm:$0xff] %v88_v0 }

</bundles_post_ra>
